<compile_context>
chip_gen: v6e
topology: v6e:2x2x1
jax: 0.10.0
libtpu: 0.0.40
codegen_flags: <defaults>
</compile_context>

<pallas_src>
import math

import jax
import jax.numpy as jnp
from jax.experimental import pallas as pl
from jax.experimental.pallas import tpu as pltpu


def _temporal_rope_kernel(t_ref, sfreq_ref, out_ref):
    # t_ref:     [tile, G+1]  G folded time positions + a trailing ones column
    # sfreq_ref: [G+1, L]     scatter-frequency matrix; last row is the phase
    #                         offset (0 on cos lanes, -pi/2 on sin lanes)
    # out_ref:   [tile, L]    L = G * d_model (lane-dense, multiple of 128)
    phase = jax.lax.dot_general(
        t_ref[...], sfreq_ref[...],
        dimension_numbers=(((1,), (0,)), ((), ())),
        precision=jax.lax.Precision.HIGHEST,   # keep f32 time positions exact on MXU
        preferred_element_type=jnp.float32,
    )
    out_ref[...] = jnp.cos(phase).astype(out_ref.dtype)


def temporal_rope(t, freq, *, out_dtype=None, lane_target=512,
                  block_bytes=4 << 20, vmem_budget_bytes=12 << 20):
    """TemporalRoPE forward.

    t:    [B, T]  float time positions
    freq: [d_model // 2] learned frequencies (the nn.Parameter)
    Returns [B, T, d_model]. out_dtype defaults to t.dtype (module semantics);
    pass jnp.bfloat16 to halve HBM store traffic when the consumer allows it.
    """
    B, T = t.shape
    half = freq.shape[0]
    d_model = 2 * half
    if out_dtype is None:
        out_dtype = t.dtype
    osz = jnp.dtype(out_dtype).itemsize
    N = B * T

    # ---- lane folding: pack G consecutive positions per 128*k-lane output row ----
    # g0 = minimum fold making L = G*d_model a multiple of 128 (unmasked stores);
    # grow toward `lane_target` lanes, preferring a G that divides N exactly so the
    # final reshape is a bitcast (no output copy).
    g0 = 128 // math.gcd(d_model, 128)
    g_max = g0 * max(1, lane_target // (g0 * d_model))
    G = g_max
    for k in range(g_max // g0, 0, -1):
        if N % (k * g0) == 0:
            G = k * g0
            break
    L = G * d_model

    # ---- row count (pad only when unavoidable) -----------------------------------
    rows = pl.cdiv(N, G)
    rows_arr = 8 if rows < 8 else rows        # only degenerate tiny inputs get padded
    n_arr = rows_arr * G

    # ---- tile sizing against a target block size and a conservative VMEM budget ---
    t_lanes = G + 1                                   # + ones column (phase offset)
    t_lanes_vmem = pl.cdiv(t_lanes, 128) * 128        # t block is lane-padded in VMEM
    per_row = 2 * (L * osz + t_lanes_vmem * 4)        # double-buffered out + t blocks
    fixed = 2 * t_lanes * L * 4                       # sfreq_aug buffers
    budget_rows = max(8, ((vmem_budget_bytes - fixed) // per_row) // 8 * 8)
    want_rows = max(8, (block_bytes // (L * osz)) // 8 * 8)
    tile = min(want_rows, budget_rows)
    if rows_arr <= tile:
        if rows_arr >= 512 and rows_arr % 16 == 0:
            tile = rows_arr // 2        # >=2 grid steps -> the "parallel" axis can
        else:                           # actually shard across v7x's two TensorCores
            tile = rows_arr             # single block (block dim == full dim is legal)
    grid = (pl.cdiv(rows_arr, tile),)
    # If `tile` does not divide rows_arr, the last grid step gets a partial block:
    # Pallas pads the input block and discards out-of-bounds output rows.

    # ---- wrapper-side parameter glue (tiny, O(G*L), independent of N) -------------
    freq_full = jnp.repeat(freq.astype(jnp.float32), 2)               # [d_model]
    off_full = jnp.where(jnp.arange(d_model) % 2 == 0,
                         0.0, -jnp.pi / 2).astype(jnp.float32)        # [d_model]
    eye = jnp.eye(G, dtype=jnp.float32)
    sfreq = (eye[:, :, None] * freq_full[None, None, :]).reshape(G, L)
    off_row = jnp.tile(off_full, (G,)).reshape(1, L)
    sfreq_aug = jnp.concatenate([sfreq, off_row], axis=0)             # [G+1, L]

    t32 = t.reshape(N).astype(jnp.float32)
    if n_arr != N:
        t32 = jnp.pad(t32, (0, n_arr - N))
    t_aug = jnp.concatenate(
        [t32.reshape(rows_arr, G), jnp.ones((rows_arr, 1), jnp.float32)], axis=-1)

    out = pl.pallas_call(
        _temporal_rope_kernel,
        out_shape=jax.ShapeDtypeStruct((rows_arr, L), out_dtype),
        grid_spec=pl.GridSpec(
            grid=grid,
            in_specs=[
                pl.BlockSpec((tile, t_lanes), lambda i: (i, 0)),
                pl.BlockSpec((t_lanes, L), lambda i: (0, 0)),
            ],
            out_specs=pl.BlockSpec((tile, L), lambda i: (i, 0)),
        ),
        compiler_params=pltpu.CompilerParams(
            dimension_semantics=("parallel",),
        ),
        cost_estimate=pl.CostEstimate(
            flops=2 * rows_arr * t_lanes * L,
            transcendentals=rows_arr * L,
            bytes_accessed=rows_arr * t_lanes * 4 + t_lanes * L * 4
                           + rows_arr * L * osz,
        ),
    )(t_aug, sfreq_aug)

    if n_arr == N:
        return out.reshape(B, T, d_model)              # pure bitcast, no copy
    # Rare path (G does not divide B*T, or fewer than 8 folded rows): drop the pad.
    return out.reshape(n_arr, d_model)[:N].reshape(B, T, d_model)


def temporal_rope_ref(t, freq):
    """Pure-JAX reference mirroring the PyTorch forward."""
    d_model = 2 * freq.shape[0]
    phase = t[..., None].astype(jnp.float32) * freq.astype(jnp.float32)
    emb = jnp.zeros(t.shape + (d_model,), jnp.float32)
    emb = emb.at[..., 0::2].set(jnp.cos(phase))
    emb = emb.at[..., 1::2].set(jnp.sin(phase))
    return emb.astype(t.dtype)


if __name__ == "__main__":
    key = jax.random.PRNGKey(0)
    k_f, k1, k2, k3, k4 = jax.random.split(key, 5)

    # Module-spec shapes: B=2, T=8, d_model=32; freq ~ N(0, 0.02) like nn.init.normal_.
    d_model = 32
    freq = 0.02 * jax.random.normal(k_f, (d_model // 2,), dtype=jnp.float32)

    t1 = jax.random.uniform(k1, (2, 8), jnp.float32, minval=0.0, maxval=100.0)
    o1 = jax.block_until_ready(temporal_rope(t1, freq))
    r1 = temporal_rope_ref(t1, freq)
    assert o1.shape == (2, 8, d_model), o1.shape
    assert jnp.allclose(o1, r1, atol=1e-5, rtol=1e-5), "mismatch (spec shape)"

    # Larger case, forced onto the multi-step pipelined grid (tile divides rows).
    t2 = jax.random.uniform(k2, (2, 2048), jnp.float32, minval=0.0, maxval=100.0)
    o2 = jax.block_until_ready(temporal_rope(t2, freq, block_bytes=256 * 1024))
    r2 = temporal_rope_ref(t2, freq)
    assert o2.shape == (2, 2048, d_model), o2.shape
    assert jnp.allclose(o2, r2, atol=1e-5, rtol=1e-5), "mismatch (multi-tile)"

    # Ragged case (fold factor does not divide B*T): tail-pad + slice path.
    t3 = jax.random.uniform(k3, (3, 7), jnp.float32, minval=0.0, maxval=100.0)
    o3 = jax.block_until_ready(temporal_rope(t3, freq))
    r3 = temporal_rope_ref(t3, freq)
    assert o3.shape == (3, 7, d_model), o3.shape
    assert jnp.allclose(o3, r3, atol=1e-5, rtol=1e-5), "mismatch (ragged)"

    # Wider feature dim (d_model = 128 -> fold factor 4, still lane-dense).
    d4 = 128
    freq4 = 0.02 * jax.random.normal(k_f, (d4 // 2,), dtype=jnp.float32)
    t4 = jax.random.uniform(k4, (2, 16), jnp.float32, minval=0.0, maxval=100.0)
    o4 = jax.block_until_ready(temporal_rope(t4, freq4))
    r4 = temporal_rope_ref(t4, freq4)
    assert o4.shape == (2, 16, d4), o4.shape
    assert jnp.allclose(o4, r4, atol=1e-5, rtol=1e-5), "mismatch (d_model=128)"

    print("KERNEL_OK")
</pallas_src>

<mosaic_0001>
module attributes {stable_mosaic.version = 11 : i64} {
  func.func @_temporal_rope_kernel(%arg0: i32, %arg1: memref<8x17xf32, #tpu.memory_space<vmem>>, %arg2: memref<17x512xf32, #tpu.memory_space<vmem>>, %arg3: memref<8x512xf32, #tpu.memory_space<vmem>>) attributes {dimension_semantics = [#tpu.dimension_semantics<parallel>], iteration_bounds = array<i64: 1>, scalar_prefetch = 0 : i64, scratch_operands = 0 : i64, tpu.core_type = #tpu.core_type<tc>, window_params = [{transform_indices = @transform_0, window_bounds = array<i64: 8, 17>}, {pipeline_mode = #tpu.pipeline_mode<synchronous>, transform_indices = @transform_1, window_bounds = array<i64: 17, 512>}, {transform_indices = @transform_2, window_bounds = array<i64: 8, 512>}]} {
    %c0 = arith.constant 0 : index
    %c0_0 = arith.constant 0 : index
    %0 = vector.load %arg1[%c0, %c0_0] : memref<8x17xf32, #tpu.memory_space<vmem>>, vector<8x17xf32>
    %c0_1 = arith.constant 0 : index
    %c0_2 = arith.constant 0 : index
    %1 = vector.load %arg2[%c0_1, %c0_2] : memref<17x512xf32, #tpu.memory_space<vmem>>, vector<17x512xf32>
    %cst = arith.constant dense<0.000000e+00> : vector<8x512xf32>
    %2 = tpu.matmul %0, %1, %cst {dimension_numbers = #tpu.dot_dimension_numbers<[1], [0], [0], [1], [0, 0, 1, 1], [], []>, precision = #tpu.contract_precision<fp32>} : vector<8x17xf32>, vector<17x512xf32>, vector<8x512xf32> -> vector<8x512xf32>
    %3 = math.cos %2 : vector<8x512xf32>
    %c0_3 = arith.constant 0 : index
    %c0_4 = arith.constant 0 : index
    %4 = vector.load %arg3[%c0_3, %c0_4] : memref<8x512xf32, #tpu.memory_space<vmem>>, vector<8x512xf32>
    tpu.vector_store %arg3[%c0_3, %c0_4], %3 {strides = array<i32>} : memref<8x512xf32, #tpu.memory_space<vmem>>, vector<8x512xf32>,
    return
  }
  func.func @transform_0(%arg0: i32) -> (i32, i32) {
    %c0_i32 = arith.constant 0 : i32
    %c0_i32_0 = arith.constant 0 : i32
    return %arg0, %c0_i32 : i32, i32
  }
  func.func @transform_1(%arg0: i32) -> (i32, i32) {
    %c0_i32 = arith.constant 0 : i32
    %c0_i32_0 = arith.constant 0 : i32
    %c0_i32_1 = arith.constant 0 : i32
    return %c0_i32, %c0_i32_0 : i32, i32
  }
  func.func @transform_2(%arg0: i32) -> (i32, i32) {
    %c0_i32 = arith.constant 0 : i32
    %c0_i32_0 = arith.constant 0 : i32
    return %arg0, %c0_i32 : i32, i32
  }
}

</mosaic_0001>

<bundles_post_ra>
// kernel: tpu_custom_call.1
= control target key start
LH: loop header
LB: loop body
LE: loop exit
PB: predicated region body
PF: predicated region fallthrough
CT: control target
= control target key end

     0   :  { %7 = vsyncpa [#allocation3], 0  ;;  %s2172_s0 = inlined_call_operand.hbm [shape: f32[8,17], index: 0, kind: input, shape index: {}]   ;;  %s2173_s1 = inlined_call_operand.hbm [shape: f32[17,512], index: 1, kind: input, shape index: {}]   ;;  %s2174_s2 = inlined_call_operand.hbm [shape: f32[8,512], index: 2, kind: output, shape index: {}]  }
   0x1   :  { %8 = vsyncpa [#allocation6], 0 }
   0x2   :  { %9 = vsyncpa [#allocation4], 0  ;;  %s1660_s9 = smov [#allocation2]   ;;  %s1661_s11 = smov [#allocation5]  }
   0x3   :  { %s16_s10 = sshll.u32 %s1660_s9, 4  ;;  %s25_s12 = sshll.u32 %s1661_s11, 4  ;;  %s17_s10 = int_to_ptr.vmem [resolvable:$true] %s16_s10  ;;  %s26_s12 = int_to_ptr.vmem [resolvable:$true] %s25_s12 }
   0x4   :  { %s1602_s13 = scalar_lea.vmem %s17_s10, 128  ;;  %p1607_p1 = scmp.lt.s32.totalorder %s17_s10, %s17_s10 }
   0x5   :  { %p1603_p0 = scmp.ne.s32.totalorder %s17_s10, %s1602_s13  ;;  %p1608_p2 = scmp.lt.s32.totalorder %s1602_s13, %s1602_s13 }
   0x7   :  { %p1609_p3 = por %p1608_p2, %p1607_p1 }
   0x9   :  { %p1610_p4 = pnand %p1609_p3, %p1603_p0 }
   0xb   :  { %1613 = shalt.err (!%p1610_p4)
}
   0xc   :  { %19 = dma.hbm_to_vmem [thread:$0]  %s2172_s0, 128, %s17_s10, [#allocation3]  }
   0xd   :  { %s1622_s16 = scalar_lea.vmem %s26_s12, 1536  ;;  %p1627_p6 = scmp.lt.s32.totalorder %s26_s12, %s26_s12 }
   0xe   :  { %p1623_p5 = scmp.ne.s32.totalorder %s26_s12, %s1622_s16  ;;  %p1628_p7 = scmp.lt.s32.totalorder %s1622_s16, %s1622_s16 }
  0x10   :  { %p1629_p8 = por %p1628_p7, %p1627_p6 }
  0x12   :  { %p1630_p9 = pnand %p1629_p8, %p1623_p5 }
  0x14   :  { %1633 = shalt.err (!%p1630_p9)
}
  0x15   :  { %s1662_s17 = smov 512   ;;  %s1663_s18 = smov 32  }
  0x16   :  { %31 = dma.hbm_to_vmem [thread:$0]  %s2173_s1, 1536, %s26_s12, [#allocation6], %s1662_s17, %s1662_s17, %s1663_s18  }
  0x17   :  { %1654 = dma.done.wait [#allocation3], 128  }
  0x18   :  { %1655 = vsyncadd [#allocation3], 4294967168 }
  0x19   :  { %1656 = dma.done.wait [#allocation6], 1536  }
  0x1a   :  { %1657 = vsyncadd [#allocation6], 4294965760  ;;  %v1664_v0 = vmov 0.0   ;;  %vm55_vm0 = vcmask 1040384   ;;  %v48_v1 = vld [vmem:[#allocation5 + $0x48] sm:$0x1] }
  0x1b   :  { %138 = vmatprep.mubr.f32.mxu0 %v1664_v0  ;;  %244 = vmatprep.mubr.f32.mxu1 %v1664_v0  ;;  %v47_v2 = vld [vmem:[#allocation5 + $0x40] sm:$0x1]  ;;  %v44_v3 = vld [vmem:[#allocation5 + $0x28] sm:$0xff]  ;;  %vm51_vm1 = vcmask 138240   ;;  %v60_v4 = vsel %vm55_vm0, %v48_v1, 0  ;;  %v38_v14 = vld [vmem:[#allocation2] sm:$0xff] }
  0x1c   :  { %v57_v5 = vsel %vm55_vm0, %v47_v2, 0  ;;  %v1697_v6 = vand.u32 4294901760, %v44_v3  ;;  %v43_v7 = vld [vmem:[#allocation5 + $0x20] sm:$0xff]  ;;  %v40_v8 = vld [vmem:[#allocation5 + $0x8] sm:$0xff]  ;;  %v1699_v10 = vand.u32 4294901760, %v60_v4  ;;  %v53_v17 = vsel %vm51_vm1, %v38_v14, 0 }
  0x1d   :  { %v39_v9 = vld [vmem:[#allocation5] sm:$0xff]  ;;  %v1701_v11 = vand.u32 4294901760, %v57_v5  ;;  %v1703_v12 = vand.u32 4294901760, %v43_v7  ;;  %v1705_v13 = vand.u32 4294901760, %v40_v8  ;;  %v1719_v20 = vand.u32 4294901760, %v53_v17  ;;  %v46_v50 = vld [vmem:[#allocation5 + $0x38] sm:$0xff] }
  0x1e   :  { %v1707_v15 = vand.u32 4294901760, %v39_v9  ;;  %v1710_v16 = vsub.f32 %v44_v3, %v1697_v6  ;;  %95 = vmatprep.subr.mxu0 %v1699_v10  ;;  %v1714_v18 = vsub.f32 %v60_v4, %v1699_v10  ;;  %v50_v38 = vld [vmem:[#allocation5 + $0x58] sm:$0x1]  ;;  %v49_v43 = vld [vmem:[#allocation5 + $0x50] sm:$0x1]  ;;  %v1776_v55 = vand.u32 4294901760, %v46_v50 }
  0x1f   :  { %v1717_v19 = vsub.f32 %v57_v5, %v1701_v11  ;;  %v1722_v21 = vsub.f32 %v43_v7, %v1703_v12  ;;  %97 = vmatpush1.msra.mxu0 %v1701_v11  ;;  %v1727_v23 = vsub.f32 %v40_v8, %v1705_v13  ;;  %v1736_v27 = vsub.f32 %v53_v17, %v1719_v20  ;;  %v45_v52 = vld [vmem:[#allocation5 + $0x30] sm:$0xff]  ;;  %v42_v54 = vld [vmem:[#allocation5 + $0x18] sm:$0xff]  ;;  %s1671_s0 = smov [#allocation7]  }
  0x20   :  { %v190_v22 = vand.u32 4294901760, %v1710_v16  ;;  %v1730_v24 = vsub.f32 %v39_v9, %v1707_v15  ;;  %99 = vmatprep.subr.mxu0 %v1697_v6  ;;  %v178_v25 = vand.u32 4294901760, %v1714_v18  ;;  %v66_v47 = vsel %vm55_vm0, %v50_v38, 0  ;;  %v41_v56 = vld [vmem:[#allocation5 + $0x10] sm:$0xff]  ;;  %s1524_s1 = sshll.u32 %s1671_s0, 4  ;;  %s1525_s1 = int_to_ptr.vmem [resolvable:$true] %s1524_s1 }
  0x21   :  { %v184_v26 = vand.u32 4294901760, %v1717_v19  ;;  %v196_v28 = vand.u32 4294901760, %v1722_v21  ;;  %101 = vmatpush1.msra.mxu0 %v1703_v12  ;;  %v202_v30 = vand.u32 4294901760, %v1727_v23  ;;  %v1749_v34 = vand.u32 4294901760, %v1736_v27  ;;  %s1634_s21 = scalar_lea.vmem %s1525_s1, 512  ;;  %p1639_p11 = scmp.lt.s32.totalorder %s1525_s1, %s1525_s1 }
  0x22   :  { %v191_v29 = vsub.f32 %v1710_v16, %v190_v22  ;;  %v208_v31 = vand.u32 4294901760, %v1730_v24  ;;  %103 = vmatprep.subr.mxu0 %v1705_v13  ;;  %v179_v32 = vsub.f32 %v1714_v18, %v178_v25  ;;  %v63_v49 = vsel %vm55_vm0, %v49_v43, 0  ;;  %p1635_p10 = scmp.ne.s32.totalorder %s1525_s1, %s1634_s21  ;;  %p1640_p12 = scmp.lt.s32.totalorder %s1634_s21, %s1634_s21 }
  0x23   :  { %v185_v33 = vsub.f32 %v1717_v19, %v184_v26  ;;  %v197_v35 = vsub.f32 %v1722_v21, %v196_v28  ;;  %105 = vmatpush1.msra.mxu0 %v1707_v15  ;;  %v203_v36 = vsub.f32 %v1727_v23, %v202_v30  ;;  %v142_v42 = vsub.f32 %v1736_v27, %v1749_v34 }
  0x24   :  { %v209_v37 = vsub.f32 %v1730_v24, %v208_v31  ;;  %v180_v39 = vand.u32 4294901760, %v179_v32  ;;  %v192_v41 = vand.u32 4294901760, %v191_v29  ;;  %280 = vmatprep.subr.mxu0 %v1714_v18  ;;  %v1770_v51 = vand.u32 4294901760, %v66_v47  ;;  %p1641_p13 = por %p1640_p12, %p1639_p11 }
  0x25   :  { %v186_v40 = vand.u32 4294901760, %v185_v33  ;;  %v198_v44 = vand.u32 4294901760, %v197_v35  ;;  %v1764_v45 = vand.u32 4294901760, %v142_v42  ;;  %v204_v46 = vand.u32 4294901760, %v203_v36 }
  0x26   :  { %181 = vmatprep.subr.mxu1 %v180_v39  ;;  %v210_v48 = vand.u32 4294901760, %v209_v37  ;;  %v1773_v53 = vand.u32 4294901760, %v63_v49  ;;  %v1780_v57 = vand.u32 4294901760, %v45_v52  ;;  %v1784_v58 = vand.u32 4294901760, %v42_v54  ;;  %p1642_p0 = pnand %p1641_p13, %p1635_p10 }
  0x27   :  { %187 = vmatpush1.msra.mxu1 %v186_v40  ;;  %144 = vmatmul.mubr.f32.vlgmr.msra.gmra.mxu0 %v1764_v45  ;;  %v1787_v59 = vsub.f32 %v66_v47, %v1770_v51  ;;  %v1794_v61 = vand.u32 4294901760, %v41_v56  ;;  %v1799_v62 = vsub.f32 %v46_v50, %v1776_v55 }
  0x28   :  { %193 = vmatprep.subr.mxu1 %v192_v41  ;;  %283 = vmatpush1.msra.mxu0 %v1717_v19  ;;  %v1792_v60 = vsub.f32 %v63_v49, %v1773_v53  ;;  %v1803_v63 = vsub.f32 %v45_v52, %v1780_v57  ;;  %v1808_v2 = vsub.f32 %v42_v54, %v1784_v58 }
  0x29   :  { %199 = vmatpush1.msra.mxu1 %v198_v44  ;;  %286 = vmatprep.subr.mxu0 %v1710_v16  ;;  %v695_v1 = vand.u32 4294901760, %v1787_v59  ;;  %v1814_v3 = vsub.f32 %v41_v56, %v1794_v61  ;;  %v707_v5 = vand.u32 4294901760, %v1799_v62 }
  0x2a   :  { %205 = vmatprep.subr.mxu1 %v204_v46  ;;  %289 = vmatpush1.msra.mxu0 %v1722_v21  ;;  %v701_v4 = vand.u32 4294901760, %v1792_v60  ;;  %v713_v7 = vand.u32 4294901760, %v1803_v63  ;;  %v719_v9 = vand.u32 4294901760, %v1808_v2 }
  0x2b   :  { %211 = vmatpush1.msra.mxu1 %v210_v48  ;;  %292 = vmatprep.subr.mxu0 %v1727_v23  ;;  %v696_v8 = vsub.f32 %v1787_v59, %v695_v1  ;;  %v725_v16 = vand.u32 4294901760, %v1814_v3 }
  0x2c   :  { %246 = vmatmul.mubr.f32.vlgmr.msra.gmra.mxu1 %v1719_v20  ;;  %364 = vmatprep.subr.mxu1 %v1699_v10  ;;  %v702_v14 = vsub.f32 %v1792_v60, %v701_v4  ;;  %v714_v17 = vsub.f32 %v1803_v63, %v713_v7  ;;  %v720_v18 = vsub.f32 %v1808_v2, %v719_v9 }
  0x2d   :  { %295 = vmatpush1.msra.mxu0 %v1730_v24  ;;  %328 = vmatprep.mubr.f32.mxu0 %v1664_v0  ;;  %v726_v19 = vsub.f32 %v1814_v3, %v725_v16 }
  0x2e   :  { %366 = vmatpush1.msra.mxu1 %v1701_v11  ;;  %331 = vmatmul.mubr.f32.vlgmr.msra.gmra.mxu0 %v1736_v27  ;;  %v721_v21 = vand.u32 4294901760, %v720_v18 }
  0x2f   :  { %368 = vmatprep.subr.mxu1 %v1697_v6  ;;  %446 = vmatprep.subr.mxu0 %v178_v25 }
  0x30   :  { %370 = vmatpush1.msra.mxu1 %v1703_v12  ;;  %450 = vmatpush1.msra.mxu0 %v184_v26 }
  0x31   :  { %372 = vmatprep.subr.mxu1 %v1705_v13  ;;  %454 = vmatprep.subr.mxu0 %v190_v22 }
  0x32   :  { %374 = vmatpush1.msra.mxu1 %v1707_v15  ;;  %407 = vmatprep.mubr.f32.mxu1 %v1664_v0 }
  0x33   :  { %458 = vmatpush1.msra.mxu0 %v196_v28  ;;  %411 = vmatmul.mubr.f32.vlgmr.msra.gmra.mxu1 %v1749_v34 }
  0x34   :  { %462 = vmatprep.subr.mxu0 %v202_v30  ;;  %534 = vmatprep.subr.mxu1 %v1699_v10  ;;  %v708_v10 = vsub.f32 %v1799_v62, %v707_v5 }
  0x35   :  { %466 = vmatpush1.msra.mxu0 %v208_v31  ;;  %499 = vmatprep.mubr.f32.mxu0 %v1664_v0 }
  0x36   :  { %536 = vmatpush1.msra.mxu1 %v1701_v11  ;;  %501 = vmatmul.mubr.f32.vlgmr.msra.gmra.mxu0 %v1719_v20  ;;  %v697_v11 = vand.u32 4294901760, %v696_v8  ;;  %v1666_v8 = vmov 2475754826  }
  0x37   :  { %538 = vmatprep.subr.mxu1 %v1697_v6  ;;  %612 = vmatprep.subr.mxu0 %v1770_v51  ;;  %v703_v6 = vand.u32 4294901760, %v702_v14  ;;  %v1667_v14 = vmov 2131351028  }
  0x38   :  { %540 = vmatpush1.msra.mxu1 %v1703_v12  ;;  %614 = vmatpush1.msra.mxu0 %v1773_v53  ;;  %v709_v12 = vand.u32 4294901760, %v708_v10  ;;  %v1668_v10 = vmov 2102212464  }
  0x39   :  { %542 = vmatprep.subr.mxu1 %v1705_v13  ;;  %616 = vmatprep.subr.mxu0 %v1776_v55  ;;  %v715_v13 = vand.u32 4294901760, %v714_v17 }
  0x3a   :  { %544 = vmatpush1.msra.mxu1 %v1707_v15  ;;  %577 = vmatprep.mubr.f32.mxu1 %v1664_v0  ;;  %v727_v15 = vand.u32 4294901760, %v726_v19 }
  0x3b   :  { %618 = vmatpush1.msra.mxu0 %v1780_v57  ;;  %579 = vmatmul.mubr.f32.vlgmr.msra.gmra.mxu1 %v1719_v20 }
  0x3c   :  { %620 = vmatprep.subr.mxu0 %v1784_v58  ;;  %698 = vmatprep.subr.mxu1 %v697_v11  ;;  %v1669_v11 = vmov 920167782  }
  0x3d   :  { %622 = vmatpush1.msra.mxu0 %v1794_v61  ;;  %704 = vmatpush1.msra.mxu1 %v703_v6 }
  0x3e   :  { %655 = vmatprep.mubr.f32.mxu0 %v1664_v0  ;;  %710 = vmatprep.subr.mxu1 %v709_v12 }
  0x3f   :  { %797 = vmatprep.subr.mxu0 %v1787_v59  ;;  %661 = vmatmul.mubr.f32.vlgmr.msra.gmra.mxu0 %v1764_v45 }
  0x40   :  { %716 = vmatpush1.msra.mxu1 %v715_v13  ;;  %800 = vmatpush1.msra.mxu0 %v1792_v60 }
  0x41   :  { %722 = vmatprep.subr.mxu1 %v721_v21  ;;  %803 = vmatprep.subr.mxu0 %v1799_v62 }
  0x42   :  { %728 = vmatpush1.msra.mxu1 %v727_v15  ;;  %761 = vmatprep.mubr.f32.mxu1 %v1664_v0  ;;  %v1670_v15 = vmov 1326507024  }
  0x43   :  { %806 = vmatpush1.msra.mxu0 %v1803_v63  ;;  %763 = vmatmul.mubr.f32.vlgmr.msra.gmra.mxu1 %v1719_v20 }
  0x44   :  { %809 = vmatprep.subr.mxu0 %v1808_v2  ;;  %881 = vmatprep.subr.mxu1 %v1770_v51 }
  0x45   :  { %812 = vmatpush1.msra.mxu0 %v1814_v3  ;;  %845 = vmatprep.mubr.f32.mxu0 %v1664_v0 }
  0x46   :  { %883 = vmatpush1.msra.mxu1 %v1773_v53  ;;  %848 = vmatmul.mubr.f32.vlgmr.msra.gmra.mxu0 %v1736_v27 }
  0x47   :  { %885 = vmatprep.subr.mxu1 %v1776_v55  ;;  %963 = vmatprep.subr.mxu0 %v695_v1 }
  0x48   :  { %887 = vmatpush1.msra.mxu1 %v1780_v57  ;;  %967 = vmatpush1.msra.mxu0 %v701_v4 }
  0x49   :  { %889 = vmatprep.subr.mxu1 %v1784_v58  ;;  %971 = vmatprep.subr.mxu0 %v707_v5  ;;  %v1665_v5 = vmov 683565275  }
  0x4a   :  { %891 = vmatpush1.msra.mxu1 %v1794_v61  ;;  %924 = vmatprep.mubr.f32.mxu1 %v1664_v0 }
  0x4b   :  { %975 = vmatpush1.msra.mxu0 %v713_v7  ;;  %928 = vmatmul.mubr.f32.vlgmr.msra.gmra.mxu1 %v1749_v34 }
  0x4c   :  { %979 = vmatprep.subr.mxu0 %v719_v9  ;;  %1051 = vmatprep.subr.mxu1 %v1770_v51 }
  0x4d   :  { %983 = vmatpush1.msra.mxu0 %v725_v16  ;;  %1016 = vmatprep.mubr.f32.mxu0 %v1664_v0 }
  0x4e   :  { %1053 = vmatpush1.msra.mxu1 %v1773_v53  ;;  %1018 = vmatmul.mubr.f32.vlgmr.msra.gmra.mxu0 %v1719_v20 }
  0x4f   :  { %1055 = vmatprep.subr.mxu1 %v1776_v55  ;;  %1094 = vmatprep.mubr.f32.mxu1 %v1664_v0 }
  0x50   :  { %1057 = vmatpush1.msra.mxu1 %v1780_v57 }
  0x51   :  { %1059 = vmatprep.subr.mxu1 %v1784_v58 }
  0x52   :  { %1061 = vmatpush1.msra.mxu1 %v1794_v61 }
  0x53   :  { %1096 = vmatmul.mubr.f32.vlgmr.msra.gmra.mxu1 %v1719_v20 }
  0xe7   :  { %v145_v22 = vpop.f32.mrf.mxu0 }
  0xe9   :  { %v147_v23 = vpop.f32.mrf.mxu0 }
  0xec   :  { %v247_v24 = vpop.f32.mrf.mxu1 }
  0xed   :  { %v248_v27 = vadd.f32 %v247_v24, %v145_v22 }
  0xee   :  { %v249_v25 = vpop.f32.mrf.mxu1  ;;  %v332_v26 = vpop.f32.mrf.mxu0 }
  0xef   :  { %v250_v28 = vadd.f32 %v249_v25, %v147_v23  ;;  %v333_v31 = vadd.f32 %v332_v26, %v248_v27 }
  0xf0   :  { %v334_v29 = vpop.f32.mrf.mxu0 }
  0xf1   :  { %v335_v33 = vadd.f32 %v334_v29, %v250_v28 }
  0xf3   :  { %v412_v30 = vpop.f32.mrf.mxu1 }
  0xf4   :  { %v413_v34 = vadd.f32 %v412_v30, %v333_v31 }
  0xf5   :  { %v414_v32 = vpop.f32.mrf.mxu1 }
  0xf6   :  { %v502_v0 = vpop.f32.mrf.mxu0  ;;  %v415_v35 = vadd.f32 %v414_v32, %v335_v33 }
  0xf7   :  { %v503_v37 = vadd.f32 %v502_v0, %v413_v34 }
  0xf8   :  { %v504_v36 = vpop.f32.mrf.mxu0 }
  0xf9   :  { %v505_v39 = vadd.f32 %v504_v36, %v415_v35 }
  0xfb   :  { %v580_v38 = vpop.f32.mrf.mxu1 }
  0xfc   :  { %v1885_v20 = vadd.f32 %v580_v38, %v503_v37 }
  0xfd   :  { %v582_v40 = vpop.f32.mrf.mxu1 }
  0xfe   :  { %v1102_v41 = vand.u32 2147483647, %v1885_v20  ;;  %v1105_v42 = vand.u32 2139095040, %v1885_v20  ;;  %v1889_v43 = vadd.f32 %v582_v40, %v505_v39  ;;  %vm1104_vm14 = vcmp.lt.s32.totalorder %v1885_v20, 0 }
  0xff   :  { %v662_v53 = vpop.f32.mrf.mxu0 }
 0x100   :  { %v1106_v44 = vshrl.u32 %v1105_v42, 23  ;;  %v1109_v45 = vand.u32 8388607, %v1102_v41  ;;  %v1205_v46 = vand.u32 2147483647, %v1889_v43  ;;  %v1208_v47 = vand.u32 2139095040, %v1889_v43 }
 0x101   :  { %v664_v62 = vpop.f32.mrf.mxu0  ;;  %vm1985_vm15 = vcmp.le.f32.partialorder %v1102_v41, 0.7853982 }
 0x102   :  { %v1534_v48 = vadd.s32 4294967169, %v1106_v44  ;;  %v1209_v49 = vshrl.u32 %v1208_v47, 23  ;;  %v1212_v50 = vand.u32 8388607, %v1205_v46  ;;  %v1110_v54 = vor.u32 8388608, %v1109_v45 }
 0x103   :  { %v764_v51 = vpop.f32.mrf.mxu1 }
 0x104   :  { %v1112_v52 = vadd.s32 1, %v1534_v48  ;;  %v1538_v55 = vadd.s32 4294967169, %v1209_v49  ;;  %v1213_v56 = vor.u32 8388608, %v1212_v50  ;;  %v1897_v63 = vshll.u32 %v1110_v54, 8 }
 0x105   :  { %v766_v57 = vpop.f32.mrf.mxu1  ;;  %v765_v2 = vadd.f32 %v764_v51, %v662_v53 }
 0x106   :  { %vm1113_vm2 = vcmp.gt.s32.totalorder %v1112_v52, 0  ;;  %v1215_v59 = vadd.s32 1, %v1538_v55  ;;  %v1899_v1 = vshll.u32 %v1213_v56, 8  ;;  %v1901_v3 = vadd.f32 %v766_v57, %v664_v62  ;;  %v849_v30 = vpop.f32.mrf.mxu0 }
 0x107   :  { %v1114_v58 = vsel %vm1113_vm2, %v1112_v52, 0  ;;  %v850_v42 = vadd.f32 %v849_v30, %v765_v2 }
 0x108   :  { %v1115_v60 = vshrl.u32 %v1114_v58, 5  ;;  %v1116_v61 = vand.u32 31, %v1114_v58  ;;  %vm1216_vm3 = vcmp.gt.s32.totalorder %v1215_v59, 0 }
 0x109   :  { %v1217_v26 = vsel %vm1216_vm3, %v1215_v59, 0 }
 0x10a   :  { %v1117_v4 = vsub.s32 32, %v1116_v61  ;;  %v1119_v7 = vshll.u32 %v1665_v5, %v1116_v61  ;;  %v1122_v9 = vshll.u32 %v1666_v8, %v1116_v61  ;;  %v1125_v16 = vshll.u32 %v1667_v14, %v1116_v61 }
 0x10b   :  { %v1128_v17 = vshll.u32 %v1668_v10, %v1116_v61  ;;  %v1131_v18 = vshll.u32 %v1669_v11, %v1116_v61  ;;  %vm1134_vm4 = vcmp.lt.s32.totalorder %v1115_v60, 1  ;;  %vm1135_vm5 = vcmp.lt.s32.totalorder %v1115_v60, 2 }
 0x10c   :  { %v1120_v6 = vshrl.u32 %v1666_v8, %v1117_v4  ;;  %v1123_v19 = vshrl.u32 %v1667_v14, %v1117_v4  ;;  %v1126_v12 = vshrl.u32 %v1668_v10, %v1117_v4  ;;  %v1118_v13 = vshrl.u32 %v1665_v5, %v1117_v4 }
 0x10d   :  { %v1129_v21 = vshrl.u32 %v1669_v11, %v1117_v4  ;;  %v1132_v22 = vshrl.u32 %v1670_v15, %v1117_v4  ;;  %vm1136_vm6 = vcmp.lt.s32.totalorder %v1115_v60, 3  ;;  %vm1137_vm7 = vcmp.lt.s32.totalorder %v1115_v60, 4 }
 0x10e   :  { %v1121_v23 = vor.u32 %v1120_v6, %v1119_v7  ;;  %v1124_v24 = vor.u32 %v1123_v19, %v1122_v9  ;;  %v1127_v25 = vor.u32 %v1126_v12, %v1125_v16  ;;  %v1219_v29 = vand.u32 31, %v1217_v26 }
 0x10f   :  { %v1130_v27 = vor.u32 %v1129_v21, %v1128_v17  ;;  %v1133_v28 = vor.u32 %v1132_v22, %v1131_v18  ;;  %v1218_v47 = vshrl.u32 %v1217_v26, 5  ;;  %v929_v18 = vpop.f32.mrf.mxu1 }
 0x110   :  { %v1138_v31 = vsel %vm1134_vm4, %v1118_v13, %v1121_v23  ;;  %v1139_v32 = vsel %vm1137_vm7, %v1127_v25, 2102212464  ;;  %v1142_v33 = vsel %vm1134_vm4, %v1121_v23, %v1124_v24  ;;  %v1146_v34 = vsel %vm1134_vm4, %v1124_v24, %v1127_v25  ;;  %v851_v23 = vpop.f32.mrf.mxu0 }
 0x111   :  { %v1140_v0 = vsel %vm1136_vm6, %v1124_v24, %v1139_v32  ;;  %v1143_v35 = vsel %vm1137_vm7, %v1130_v27, 920167782  ;;  %v1147_v36 = vsel %vm1137_vm7, %v1133_v28, 1326507024  ;;  %v1220_v37 = vsub.s32 32, %v1219_v29  ;;  %v931_v32 = vpop.f32.mrf.mxu1 }
 0x112   :  { %v1141_v38 = vsel %vm1135_vm5, %v1138_v31, %v1140_v0  ;;  %v1144_v39 = vsel %vm1136_vm6, %v1127_v25, %v1143_v35  ;;  %v1148_v40 = vsel %vm1136_vm6, %v1130_v27, %v1147_v36  ;;  %v1222_v48 = vshll.u32 %v1665_v5, %v1219_v29 }
 0x113   :  { %v1145_v44 = vsel %vm1135_vm5, %v1142_v33, %v1144_v39  ;;  %v1149_v45 = vsel %vm1135_vm5, %v1146_v34, %v1148_v40  ;;  %v1157_v53 = vmul.u32 %v1897_v63, %v1141_v38  ;;  %v1223_v54 = vshrl.u32 %v1666_v8, %v1220_v37  ;;  %v1019_v33 = vpop.f32.mrf.mxu0  ;;  %v1097_v40 = vpop.f32.mrf.mxu1 }
 0x114   :  { %v1926_v49 = vmul.u32.u64.low %v1897_v63, %v1149_v45  ;;  %v1927_v50 = vmul.u32.u64.high %v1897_v63, %v1149_v45, %v1926_v49  ;;  %v1930_v51 = vmul.u32.u64.low %v1897_v63, %v1145_v44  ;;  %v1931_v52 = vmul.u32.u64.high %v1897_v63, %v1145_v44, %v1930_v51 }
 0x115   :  { %v1225_v55 = vshll.u32 %v1666_v8, %v1219_v29  ;;  %v1226_v56 = vshrl.u32 %v1667_v14, %v1220_v37  ;;  %v1228_v57 = vshll.u32 %v1667_v14, %v1219_v29  ;;  %v1229_v58 = vshrl.u32 %v1668_v10, %v1220_v37  ;;  %v1021_v49 = vpop.f32.mrf.mxu0 }
 0x116   :  { %v1231_v59 = vshll.u32 %v1668_v10, %v1219_v29  ;;  %v1232_v60 = vshrl.u32 %v1669_v11, %v1220_v37  ;;  %v1224_v61 = vor.u32 %v1223_v54, %v1222_v48  ;;  %v1234_v2 = vshll.u32 %v1669_v11, %v1219_v29 }
 0x117   :  { %v1227_v62 = vor.u32 %v1226_v56, %v1225_v55  ;;  %v1235_v63 = vshrl.u32 %v1670_v15, %v1220_v37  ;;  %vm1159_vm8 = vc.u32 %v1927_v50, %v1930_v51  ;;  %v1160_v4 = vadd.s32 1, %v1931_v52 }
 0x118   :  { %v1221_v7 = vshrl.u32 %v1665_v5, %v1220_v37  ;;  %v1230_v9 = vor.u32 %v1229_v58, %v1228_v57  ;;  %v1233_v16 = vor.u32 %v1232_v60, %v1231_v59  ;;  %vm1237_vm9 = vcmp.lt.s32.totalorder %v1218_v47, 1 }
 0x119   :  { %v1236_v17 = vor.u32 %v1235_v63, %v1234_v2  ;;  %vm1238_vm10 = vcmp.lt.s32.totalorder %v1218_v47, 2  ;;  %v1161_v6 = vsel %vm1159_vm8, %v1160_v4, %v1931_v52  ;;  %vm1239_vm11 = vcmp.lt.s32.totalorder %v1218_v47, 3 }
 0x11a   :  { %vm1240_vm12 = vcmp.lt.s32.totalorder %v1218_v47, 4  ;;  %v1245_v19 = vsel %vm1237_vm9, %v1224_v61, %v1227_v62  ;;  %v1162_v12 = vadd.s32 %v1161_v6, %v1157_v53  ;;  %v1249_v22 = vsel %vm1237_vm9, %v1227_v62, %v1230_v9 }
 0x11b   :  { %v1242_v13 = vsel %vm1240_vm12, %v1230_v9, 2102212464  ;;  %v1246_v21 = vsel %vm1240_vm12, %v1233_v16, 920167782  ;;  %v1241_v24 = vsel %vm1237_vm9, %v1221_v7, %v1224_v61  ;;  %v1250_v26 = vsel %vm1240_vm12, %v1236_v17, 1326507024 }
 0x11c   :  { %v1247_v25 = vsel %vm1239_vm11, %v1230_v9, %v1246_v21  ;;  %v930_v27 = vadd.f32 %v929_v18, %v850_v42  ;;  %v1163_v28 = vadd.s32 536870912, %v1162_v12  ;;  %v1243_v29 = vsel %vm1239_vm11, %v1227_v62, %v1242_v13 }
 0x11d   :  { %v1248_v30 = vsel %vm1238_vm10, %v1245_v19, %v1247_v25  ;;  %v1251_v31 = vsel %vm1239_vm11, %v1233_v16, %v1250_v26  ;;  %v852_v36 = vadd.f32 %v851_v23, %v1901_v3  ;;  %v1244_v42 = vsel %vm1238_vm10, %v1241_v24, %v1243_v29  ;;  %v1099_v3 = vpop.f32.mrf.mxu1 }
 0x11e   :  { %v1252_v34 = vsel %vm1238_vm10, %v1249_v22, %v1251_v31  ;;  %v1952_v0 = vmul.u32.u64.low %v1899_v1, %v1248_v30  ;;  %v1953_v35 = vmul.u32.u64.high %v1899_v1, %v1248_v30, %v1952_v0  ;;  %v1164_v37 = vshrl.u32 %v1163_v28, 30 }
 0x11f   :  { %v1957_v38 = vmul.u32.u64.low %v1899_v1, %v1252_v34  ;;  %v1958_v39 = vmul.u32.u64.high %v1899_v1, %v1252_v34, %v1957_v38  ;;  %v932_v44 = vadd.f32 %v931_v32, %v852_v36  ;;  %v1020_v45 = vadd.f32 %v1019_v33, %v930_v27 }
 0x120   :  { %v1165_v48 = vshll.u32 %v1164_v37, 30  ;;  %v1263_v52 = vadd.s32 1, %v1953_v35  ;;  %v1260_v55 = vmul.u32 %v1899_v1, %v1244_v42  ;;  %v1188_v61 = vsub.s32 4, %v1164_v37 }
 0x121   :  { %v1962_v53 = vadd.f32 %v1097_v40, %v1020_v45  ;;  %vm1262_vm13 = vc.u32 %v1958_v39, %v1952_v0  ;;  %v1022_v57 = vadd.f32 %v1021_v49, %v932_v44  ;;  %v1158_v24 = vadd.s32 %v1930_v51, %v1927_v50 }
 0x122   :  { %v1166_v54 = vsub.s32 %v1162_v12, %v1165_v48  ;;  %v1264_v56 = vsel %vm1262_vm13, %v1263_v52, %v1953_v35  ;;  %v1980_v6 = vsel %vm1104_vm14, %v1188_v61, %v1164_v37  ;;  %v1261_v27 = vadd.s32 %v1952_v0, %v1958_v39 }
 0x123   :  { %v1308_v47 = vand.u32 2147483647, %v1962_v53  ;;  %v1265_v59 = vadd.s32 %v1264_v56, %v1260_v55  ;;  %v1311_v60 = vand.u32 2139095040, %v1962_v53  ;;  %v1969_v62 = vadd.f32 %v1099_v3, %v1022_v57 }
 0x124   :  { %v1168_v58 = vsub.s32 0, %v1166_v54  ;;  %v1191_v41 = vsel %vm1985_vm15, 0, %v1980_v6  ;;  %vm2043_vm8 = vcmp.le.f32.partialorder %v1205_v46, 0.7853982  ;;  %vm1207_vm9 = vcmp.lt.s32.totalorder %v1889_v43, 0 }
 0x125   :  { %v1266_v63 = vadd.s32 536870912, %v1265_v59  ;;  %v1312_v4 = vshrl.u32 %v1311_v60, 23  ;;  %v1315_v1 = vand.u32 8388607, %v1308_v47  ;;  %v1411_v7 = vand.u32 2147483647, %v1969_v62 }
 0x126   :  { %v1535_v2 = vmin.u32 %v1168_v58, %v1166_v54  ;;  %v1414_v9 = vand.u32 2139095040, %v1969_v62 }
 0x127   :  { %v1976_v17 = vshrl.u32 %v1266_v63, 30  ;;  %v1542_v18 = vadd.s32 4294967169, %v1312_v4  ;;  %v1316_v21 = vor.u32 8388608, %v1315_v1  ;;  %v1993_v26 = vand.u32 8388607, %v1411_v7 }
 0x128   :  { %v1170_v16 = vclz %v1535_v2  ;;  %v1415_v19 = vshrl.u32 %v1414_v9, 23 }
 0x129   :  { %v1268_v13 = vshll.u32 %v1976_v17, 30  ;;  %v1318_v22 = vadd.s32 1, %v1542_v18  ;;  %v2002_v33 = vshll.u32 %v1316_v21, 8  ;;  %v1291_v34 = vsub.s32 4, %v1976_v17 }
 0x12a   :  { %v1536_v12 = vadd.s32 4294967294, %v1170_v16  ;;  %v1546_v25 = vadd.s32 4294967169, %v1415_v19  ;;  %v1419_v0 = vor.u32 8388608, %v1993_v26 }
 0x12b   :  { %v1996_v28 = vsub.s32 %v1265_v59, %v1268_v13  ;;  %vm1319_vm1 = vcmp.gt.s32.totalorder %v1318_v22, 0  ;;  %v2060_v46 = vsel %vm1207_vm9, %v1291_v34, %v1976_v17 }
 0x12c   :  { %vm1537_vm0 = vcmp.lt.s32.totalorder %v1536_v12, 0  ;;  %v1320_v30 = vsel %vm1319_vm1, %v1318_v22, 0  ;;  %v1421_v31 = vadd.s32 1, %v1546_v25  ;;  %v2067_v6 = vshll.u32 %v1419_v0, 8 }
 0x12d   :  { %v1173_v29 = vsel %vm1537_vm0, 0, %v1536_v12  ;;  %v1271_v51 = vsub.s32 0, %v1996_v28  ;;  %v1322_v35 = vand.u32 31, %v1320_v30  ;;  %v1321_v40 = vshrl.u32 %v1320_v30, 5 }
 0x12e   :  { %v1174_v32 = vsub.s32 32, %v1173_v29  ;;  %v1178_v50 = vsub.s32 4294967266, %v1173_v29  ;;  %vm1422_vm2 = vcmp.gt.s32.totalorder %v1421_v31, 0  ;;  %v1175_v36 = vshll.u32 %v1166_v54, %v1173_v29 }
 0x12f   :  { %v1539_v39 = vmin.u32 %v1271_v51, %v1996_v28  ;;  %v1323_v42 = vsub.s32 32, %v1322_v35  ;;  %v1325_v44 = vshll.u32 %v1665_v5, %v1322_v35  ;;  %v2008_v45 = vsel %vm1422_vm2, %v1421_v31, 0 }
 0x130   :  { %v1176_v37 = vshrl.u32 %v1158_v24, %v1174_v32  ;;  %v1179_v38 = vadd.s32 127, %v1178_v50  ;;  %v1328_v55 = vshll.u32 %v1666_v8, %v1322_v35  ;;  %v1331_v54 = vshll.u32 %v1667_v14, %v1322_v35 }
 0x131   :  { %v1273_v52 = vclz %v1539_v39  ;;  %v1326_v3 = vshrl.u32 %v1666_v8, %v1323_v42  ;;  %v1329_v56 = vshrl.u32 %v1667_v14, %v1323_v42  ;;  %v1332_v57 = vshrl.u32 %v1668_v10, %v1323_v42 }
 0x132   :  { %v1177_v48 = vor.u32 %v1176_v37, %v1175_v36  ;;  %v1180_v49 = vshll.u32 %v1179_v38, 23  ;;  %v1334_v60 = vshll.u32 %v1668_v10, %v1322_v35  ;;  %v1335_v61 = vshrl.u32 %v1669_v11, %v1323_v42 }
 0x133   :  { %v1540_v59 = vadd.s32 4294967294, %v1273_v52  ;;  %v1324_v63 = vshrl.u32 %v1665_v5, %v1323_v42  ;;  %v1327_v4 = vor.u32 %v1326_v3, %v1325_v44  ;;  %v1330_v1 = vor.u32 %v1329_v56, %v1328_v55 }
 0x134   :  { %v1181_v58 = vor.u32 4788187, %v1180_v49  ;;  %v1184_v2 = vcvt.s32.f32 %v1177_v48  ;;  %v1333_v16 = vor.u32 %v1332_v57, %v1331_v54  ;;  %v1338_v18 = vshrl.u32 %v1670_v15, %v1323_v42 }
 0x135   :  { %vm1541_vm3 = vcmp.lt.s32.totalorder %v1540_v59, 0  ;;  %v1336_v12 = vor.u32 %v1335_v61, %v1334_v60  ;;  %v1337_v13 = vshll.u32 %v1669_v11, %v1322_v35  ;;  %vm1340_vm4 = vcmp.lt.s32.totalorder %v1321_v40, 1 }
 0x136   :  { %v1182_v9 = vand.u32 2147483647, %v1181_v58  ;;  %v1276_v19 = vsel %vm1541_vm3, 0, %v1540_v59  ;;  %vm1342_vm5 = vcmp.lt.s32.totalorder %v1321_v40, 3  ;;  %vm1343_vm6 = vcmp.lt.s32.totalorder %v1321_v40, 4 }
 0x137   :  { %v1277_v22 = vsub.s32 32, %v1276_v19  ;;  %v1281_v24 = vsub.s32 4294967266, %v1276_v19  ;;  %v1278_v25 = vshll.u32 %v1996_v28, %v1276_v19  ;;  %v1339_v29 = vor.u32 %v1338_v18, %v1337_v13 }
 0x138   :  { %v1185_v21 = vmul.f32 %v1184_v2, %v1182_v9  ;;  %v1344_v30 = vsel %vm1340_vm4, %v1324_v63, %v1327_v4  ;;  %v1345_v51 = vsel %vm1343_vm6, %v1333_v16, 2102212464  ;;  %v1348_v37 = vsel %vm1340_vm4, %v1327_v4, %v1330_v1 }
 0x139   :  { %v1279_v32 = vshrl.u32 %v1261_v27, %v1277_v22  ;;  %v1282_v50 = vadd.s32 127, %v1281_v24  ;;  %v1346_v36 = vsel %vm1342_vm5, %v1330_v1, %v1345_v51  ;;  %v1349_v35 = vsel %vm1343_vm6, %v1336_v12, 920167782 }
 0x13a   :  { %v1186_v31 = vxor.u32 2147483648, %v1185_v21  ;;  %v1353_v38 = vsel %vm1343_vm6, %v1339_v29, 1326507024  ;;  %v1352_v28 = vsel %vm1340_vm4, %v1330_v1, %v1333_v16  ;;  %vm1341_vm7 = vcmp.lt.s32.totalorder %v1321_v40, 2 }
 0x13b   :  { %v1280_v42 = vor.u32 %v1279_v32, %v1278_v25  ;;  %v1283_v44 = vshll.u32 %v1282_v50, 23  ;;  %v1350_v27 = vsel %vm1342_vm5, %v1333_v16, %v1349_v35  ;;  %v1354_v49 = vsel %vm1342_vm5, %v1336_v12, %v1353_v38 }
 0x13c   :  { %v1187_v39 = vsel %vm1104_vm14, %v1186_v31, %v1185_v21  ;;  %v1347_v55 = vsel %vm1341_vm7, %v1344_v30, %v1346_v36  ;;  %v1351_v3 = vsel %vm1341_vm7, %v1348_v37, %v1350_v27  ;;  %v1355_v56 = vsel %vm1341_vm7, %v1352_v28, %v1354_v49 }
 0x13d   :  { %v1190_v48 = vsel %vm1985_vm15, %v1885_v20, %v1187_v39  ;;  %v1284_v52 = vor.u32 4788187, %v1283_v44  ;;  %v2033_v54 = vmul.u32.u64.low %v2002_v33, %v1351_v3  ;;  %v2034_v57 = vmul.u32.u64.high %v2002_v33, %v1351_v3, %v2033_v54 }
 0x13e   :  { %1578 = vcosq.f32 %v1190_v48  ;;  %v1287_v59 = vcvt.s32.f32 %v1280_v42  ;;  %v2038_v60 = vmul.u32.u64.low %v2002_v33, %v1355_v56  ;;  %v2039_v61 = vmul.u32.u64.high %v2002_v33, %v1355_v56, %v2038_v60 }
 0x13f   :  { %1580 = vsinq.f32 %v1190_v48  ;;  %v1285_v58 = vand.u32 2147483647, %v1284_v52  ;;  %v1425_v2 = vand.u32 31, %v2008_v45  ;;  %v2053_v63 = vand.u32 3, %v1191_v41 }
 0x140   :  { %v1363_v1 = vmul.u32 %v2002_v33, %v1347_v55  ;;  %v1366_v9 = vadd.s32 1, %v2034_v57  ;;  %v1424_v16 = vshrl.u32 %v2008_v45, 5  ;;  %vm1365_vm10 = vc.u32 %v2039_v61, %v2033_v54 }
 0x141   :  { %v1288_v4 = vmul.f32 %v1287_v59, %v1285_v58  ;;  %v1426_v18 = vsub.s32 32, %v1425_v2  ;;  %v1428_v41 = vshll.u32 %v1665_v5, %v1425_v2  ;;  %v1431_v17 = vshll.u32 %v1666_v8, %v1425_v2 }
 0x142   :  { %v1367_v34 = vsel %vm1365_vm10, %v1366_v9, %v2034_v57  ;;  %v1434_v45 = vshll.u32 %v1667_v14, %v1425_v2  ;;  %v1437_v13 = vshll.u32 %v1668_v10, %v1425_v2  ;;  %vm1443_vm11 = vcmp.lt.s32.totalorder %v1424_v16, 1 }
 0x143   :  { %v1289_v23 = vxor.u32 2147483648, %v1288_v4  ;;  %v1429_v33 = vshrl.u32 %v1666_v8, %v1426_v18  ;;  %v1432_v19 = vshrl.u32 %v1667_v14, %v1426_v18  ;;  %v1368_v0 = vadd.s32 %v1367_v34, %v1363_v1 }
 0x144   :  { %v1435_v12 = vshrl.u32 %v1668_v10, %v1426_v18  ;;  %v1438_v8 = vshrl.u32 %v1669_v11, %v1426_v18  ;;  %vm1197_vm12 = vcmp.eq.s32.totalorder %v2053_v63, 0  ;;  %v1440_v30 = vshll.u32 %v1669_v11, %v1425_v2 }
 0x145   :  { %v1290_v26 = vsel %vm1207_vm9, %v1289_v23, %v1288_v4  ;;  %v1430_v22 = vor.u32 %v1429_v33, %v1428_v41  ;;  %v1433_v24 = vor.u32 %v1432_v19, %v1431_v17  ;;  %v1369_v25 = vadd.s32 536870912, %v1368_v0 }
 0x146   :  { %v1293_v21 = vsel %vm2043_vm8, %v1889_v43, %v1290_v26  ;;  %v1436_v29 = vor.u32 %v1435_v12, %v1434_v45  ;;  %v1439_v14 = vor.u32 %v1438_v8, %v1437_v13  ;;  %v1441_v10 = vshrl.u32 %v1670_v15, %v1426_v18 }
 0x147   :  { %1582 = vcosq.f32 %v1293_v21  ;;  %v2088_v31 = vshrl.u32 %v1369_v25, 30  ;;  %vm1445_vm13 = vcmp.lt.s32.totalorder %v1424_v16, 3  ;;  %vm1446_vm14 = vcmp.lt.s32.totalorder %v1424_v16, 4 }
 0x148   :  { %1584 = vsinq.f32 %v1293_v21  ;;  %v1451_v32 = vsel %vm1443_vm11, %v1430_v22, %v1433_v24  ;;  %v1427_v51 = vshrl.u32 %v1665_v5, %v1426_v18  ;;  %v1442_v36 = vor.u32 %v1441_v10, %v1440_v30 }
 0x149   :  { %v1448_v37 = vsel %vm1446_vm14, %v1436_v29, 2102212464  ;;  %v1452_v35 = vsel %vm1446_vm14, %v1439_v14, 920167782  ;;  %v1371_v39 = vshll.u32 %v2088_v31, 30  ;;  %vm1444_vm15 = vcmp.lt.s32.totalorder %v1424_v16, 2 }
 0x14a   :  { %v1453_v11 = vsel %vm1445_vm13, %v1436_v29, %v1452_v35  ;;  %v1455_v15 = vsel %vm1443_vm11, %v1433_v24, %v1436_v29  ;;  %v1447_v42 = vsel %vm1443_vm11, %v1427_v51, %v1430_v22  ;;  %v1456_v28 = vsel %vm1446_vm14, %v1442_v36, 1326507024 }
 0x14b   :  { %v1579_v50 = vpop.eup %1578  ;;  %v1454_v44 = vsel %vm1444_vm15, %v1451_v32, %v1453_v11  ;;  %v1372_v27 = vsub.s32 %v1368_v0, %v1371_v39  ;;  %v1449_v5 = vsel %vm1445_vm13, %v1433_v24, %v1448_v37  ;;  %v1457_v49 = vsel %vm1445_vm13, %v1439_v14, %v1456_v28 }
 0x14c   :  { %v1581_v38 = vpop.eup %1580  ;;  %v1201_v52 = vxor.u32 2147483648, %v1579_v50  ;;  %v1458_v55 = vsel %vm1444_vm15, %v1455_v15, %v1457_v49  ;;  %v2101_v3 = vmul.u32.u64.low %v2067_v6, %v1454_v44  ;;  %v2102_v56 = vmul.u32.u64.high %v2067_v6, %v1454_v44, %v2101_v3 }
 0x14d   :  { %v1198_v48 = vxor.u32 2147483648, %v1581_v38  ;;  %vm1200_vm0 = vcmp.eq.s32.totalorder %v2053_v63, 2  ;;  %v1294_v57 = vsel %vm2043_vm8, 0, %v2060_v46  ;;  %v1374_v58 = vsub.s32 0, %v1372_v27 }
 0x14e   :  { %v2110_v59 = vmul.u32.u64.low %v2067_v6, %v1458_v55  ;;  %v2111_v60 = vmul.u32.u64.high %v2067_v6, %v1458_v55, %v2110_v59  ;;  %v1450_v2 = vsel %vm1444_vm15, %v1447_v42, %v1449_v5  ;;  %vm1196_vm1 = vcmp.lt.s32.totalorder %v2053_v63, 2 }
 0x14f   :  { %v1199_v4 = vsel %vm1197_vm12, %v1579_v50, %v1198_v48  ;;  %v1202_v1 = vsel %vm1200_vm0, %v1201_v52, %v1581_v38  ;;  %v1543_v9 = vmin.u32 %v1374_v58, %v1372_v27  ;;  %vm1194_vm2 = vweird.f32 %v1885_v20 }
 0x150   :  { %v1203_v18 = vsel %vm1196_vm1, %v1199_v4, %v1202_v1  ;;  %v1298_v23 = vand.u32 3, %v1294_v57  ;;  %v1469_v40 = vadd.s32 1, %v2102_v56  ;;  %v1466_v17 = vmul.u32 %v2067_v6, %v1450_v2 }
 0x151   :  { %v1204_v46 = vsel %vm1194_vm2, nan, %v1203_v18  ;;  %v1376_v41 = vclz %v1543_v9  ;;  %vm1468_vm3 = vc.u32 %v2111_v60, %v2101_v3  ;;  %v1364_v13 = vadd.s32 %v2033_v54, %v2039_v61 }
 0x152   :  { %1514 = vst [vmem:[#allocation7] sm:$0xff] %v1204_v46  ;;  %v1470_v63 = vsel %vm1468_vm3, %v1469_v40, %v2102_v56  ;;  %vm1303_vm4 = vcmp.eq.s32.totalorder %v1298_v23, 2  ;;  %vm1300_vm6 = vcmp.eq.s32.totalorder %v1298_v23, 0  ;;  %vm1299_vm7 = vcmp.lt.s32.totalorder %v1298_v23, 2 }
 0x153   :  { %v1544_v33 = vadd.s32 4294967294, %v1376_v41  ;;  %v1471_v19 = vadd.s32 %v1470_v63, %v1466_v17  ;;  %vm1297_vm8 = vweird.f32 %v1889_v43  ;;  %vm1310_vm9 = vcmp.lt.s32.totalorder %v1962_v53, 0 }
 0x154   :  { %v1583_v16 = vpop.eup %1582  ;;  %vm2132_vm10 = vcmp.le.f32.partialorder %v1308_v47, 0.7853982  ;;  %v1467_v48 = vadd.s32 %v2101_v3, %v2111_v60  ;;  %v1394_v47 = vsub.s32 4, %v2088_v31  ;;  %vm1413_vm12 = vcmp.lt.s32.totalorder %v1969_v62, 0 }
 0x155   :  { %v1585_v34 = vpop.eup %1584  ;;  %v1304_v45 = vxor.u32 2147483648, %v1583_v16  ;;  %vm1545_vm5 = vcmp.lt.s32.totalorder %v1544_v33, 0  ;;  %v1472_v26 = vadd.s32 536870912, %v1471_v19  ;;  %vm2152_vm13 = vcmp.le.f32.partialorder %v1411_v7, 0.7853982 }
 0x156   :  { %v1301_v20 = vxor.u32 2147483648, %v1585_v34  ;;  %v1379_v12 = vsel %vm1545_vm5, 0, %v1544_v33  ;;  %v1395_v58 = vsel %vm1310_vm9, %v1394_v47, %v2088_v31  ;;  %vm1400_vm1 = vweird.f32 %v1962_v53 }
 0x157   :  { %v1305_v0 = vsel %vm1303_vm4, %v1304_v45, %v1585_v34  ;;  %v1380_v21 = vsub.s32 32, %v1379_v12  ;;  %v1384_v22 = vsub.s32 4294967266, %v1379_v12  ;;  %v2125_v24 = vshrl.u32 %v1472_v26, 30 }
 0x158   :  { %v1302_v6 = vsel %vm1300_vm6, %v1583_v16, %v1301_v20  ;;  %v1381_v25 = vshll.u32 %v1372_v27, %v1379_v12  ;;  %v1397_v2 = vsel %vm2132_vm10, 0, %v1395_v58  ;;  %vm1503_vm5 = vweird.f32 %v1969_v62 }
 0x159   :  { %v1306_v8 = vsel %vm1299_vm7, %v1302_v6, %v1305_v0  ;;  %v1382_v29 = vshrl.u32 %v1364_v13, %v1380_v21  ;;  %v1385_v14 = vadd.s32 127, %v1384_v22  ;;  %v1474_v30 = vshll.u32 %v2125_v24, 30 }
 0x15a   :  { %v1307_v10 = vsel %vm1297_vm8, nan, %v1306_v8  ;;  %v1401_v1 = vand.u32 3, %v1397_v2  ;;  %v1497_v63 = vsub.s32 4, %v2125_v24 }
 0x15b   :  { %v1383_v32 = vor.u32 %v1382_v29, %v1381_v25  ;;  %v1386_v50 = vshll.u32 %v1385_v14, 23  ;;  %v1475_v51 = vsub.s32 %v1471_v19, %v1474_v30  ;;  %1515 = vst [vmem:[#allocation7 + $0x8] sm:$0xff] %v1307_v10 }
 0x15c   :  { %vm1406_vm14 = vcmp.eq.s32.totalorder %v1401_v1, 2  ;;  %vm1403_vm15 = vcmp.eq.s32.totalorder %v1401_v1, 0  ;;  %vm1402_vm0 = vcmp.lt.s32.totalorder %v1401_v1, 2  ;;  %v1498_v19 = vsel %vm1413_vm12, %v1497_v63, %v2125_v24 }
 0x15d   :  { %v1387_v36 = vor.u32 4788187, %v1386_v50  ;;  %v1477_v37 = vsub.s32 0, %v1475_v51  ;;  %v1390_v61 = vcvt.s32.f32 %v1383_v32  ;;  %v1500_v45 = vsel %vm2152_vm13, 0, %v1498_v19 }
 0x15e   :  { %v1504_v20 = vand.u32 3, %v1500_v45 }
 0x15f   :  { %v1388_v54 = vand.u32 2147483647, %v1387_v36  ;;  %v1547_v35 = vmin.u32 %v1477_v37, %v1475_v51 }
 0x160   :  { %vm1509_vm2 = vcmp.eq.s32.totalorder %v1504_v20, 2  ;;  %vm1506_vm3 = vcmp.eq.s32.totalorder %v1504_v20, 0  ;;  %vm1505_vm4 = vcmp.lt.s32.totalorder %v1504_v20, 2 }
 0x161   :  { %v1391_v38 = vmul.f32 %v1390_v61, %v1388_v54  ;;  %v1479_v39 = vclz %v1547_v35 }
 0x163   :  { %v1392_v11 = vxor.u32 2147483648, %v1391_v38  ;;  %v1548_v43 = vadd.s32 4294967294, %v1479_v39 }
 0x165   :  { %v1393_v42 = vsel %vm1310_vm9, %v1392_v11, %v1391_v38  ;;  %vm1549_vm11 = vcmp.lt.s32.totalorder %v1548_v43, 0 }
 0x166   :  { %v1396_v44 = vsel %vm2132_vm10, %v1962_v53, %v1393_v42  ;;  %v1482_v28 = vsel %vm1549_vm11, 0, %v1548_v43 }
 0x167   :  { %1586 = vcosq.f32 %v1396_v44  ;;  %v1483_v27 = vsub.s32 32, %v1482_v28  ;;  %v1487_v5 = vsub.s32 4294967266, %v1482_v28  ;;  %v1484_v49 = vshll.u32 %v1475_v51, %v1482_v28 }
 0x168   :  { %1588 = vsinq.f32 %v1396_v44 }
 0x169   :  { %v1485_v52 = vshrl.u32 %v1467_v48, %v1483_v27  ;;  %v1488_v55 = vadd.s32 127, %v1487_v5 }
 0x16b   :  { %v1486_v56 = vor.u32 %v1485_v52, %v1484_v49  ;;  %v1489_v57 = vshll.u32 %v1488_v55, 23 }
 0x16d   :  { %v1490_v59 = vor.u32 4788187, %v1489_v57  ;;  %v1493_v3 = vcvt.s32.f32 %v1486_v56 }
 0x16f   :  { %v1491_v4 = vand.u32 2147483647, %v1490_v59 }
 0x171   :  { %v1494_v60 = vmul.f32 %v1493_v3, %v1491_v4 }
 0x173   :  { %v1495_v9 = vxor.u32 2147483648, %v1494_v60 }
 0x174   :  { %v1587_v18 = vpop.eup %1586 }
 0x175   :  { %v1589_v23 = vpop.eup %1588  ;;  %v1496_v31 = vsel %vm1413_vm12, %v1495_v9, %v1494_v60  ;;  %v1407_v46 = vxor.u32 2147483648, %v1587_v18 }
 0x176   :  { %v1499_v41 = vsel %vm2152_vm13, %v1969_v62, %v1496_v31  ;;  %v1404_v17 = vxor.u32 2147483648, %v1589_v23 }
 0x177   :  { %1590 = vcosq.f32 %v1499_v41  ;;  %v1408_v16 = vsel %vm1406_vm14, %v1407_v46, %v1589_v23 }
 0x178   :  { %1592 = vsinq.f32 %v1499_v41  ;;  %v1405_v7 = vsel %vm1403_vm15, %v1587_v18, %v1404_v17 }
 0x179   :  { %v1409_v34 = vsel %vm1402_vm0, %v1405_v7, %v1408_v16 }
 0x17a   :  { %v1410_v33 = vsel %vm1400_vm1, nan, %v1409_v34 }
 0x17b   :  { %1516 = vst [vmem:[#allocation7 + $0x10] sm:$0xff] %v1410_v33 }
 0x184   :  { %v1591_v26 = vpop.eup %1590 }
 0x185   :  { %v1593_v0 = vpop.eup %1592  ;;  %v1510_v12 = vxor.u32 2147483648, %v1591_v26 }
 0x186   :  { %v1507_v6 = vxor.u32 2147483648, %v1593_v0 }
 0x187   :  { %v1511_v53 = vsel %vm1509_vm2, %v1510_v12, %v1593_v0 }
 0x188   :  { %v1508_v13 = vsel %vm1506_vm3, %v1591_v26, %v1507_v6 }
 0x189   :  { %v1512_v21 = vsel %vm1505_vm4, %v1508_v13, %v1511_v53 }
 0x18a   :  { %v1513_v22 = vsel %vm1503_vm5, nan, %v1512_v21 }
 0x18b   :  { %1517 = vst [vmem:[#allocation7 + $0x18] sm:$0xff] %v1513_v22 }
 0x18c   :  { %1645 = shalt.err (!%p1642_p0)
}
 0x18d   :  { %1527 = dma.vmem_to_hbm [thread:$0]  %s1525_s1, 512, %s2174_s2, [#allocation4]  }
 0x18e   :  { %1658 = dma.done.wait [#allocation4], 512  }
 0x18f   :  { %1659 = vsyncadd [#allocation4], 4294966784 }
 0x190   :  { %1531 = vsyncpa [#allocation3], 1 }
 0x191   :  { %1532 = vsyncpa [#allocation6], 1 }
 0x192   :  { %1533 = vsyncpa [#allocation4], 1 }

</bundles_post_ra>
